<compile_context>
chip_gen: v5e
topology: v5e:2x2
jax: 0.10.0
libtpu: 0.0.40
codegen_flags: <defaults>
</compile_context>

<pallas_src>
import functools
import math

import jax
import jax.numpy as jnp
from jax.experimental import pallas as pl
from jax.experimental.pallas import tpu as pltpu

LANE = 128


def _linear_kernel(x_ref, w_ref, b_ref, o_ref):
    # x_ref: (tile, K)   w_ref: (K, N)   b_ref: (1, N)   o_ref: (tile, N)
    acc = jnp.dot(x_ref[...], w_ref[...], preferred_element_type=jnp.float32)
    o_ref[...] = (acc + b_ref[...]).astype(o_ref.dtype)


def _round_up(x, m):
    return ((x + m - 1) // m) * m


def _sublane(dtype):
    # Min second-to-last tile dim: 8 for 4-byte, 16 for 2-byte, 32 for 1-byte.
    return 8 * (4 // jnp.dtype(dtype).itemsize)


def _vmem_capacity_bytes():
    try:
        return int(pltpu.get_tpu_info().vmem_capacity_bytes)
    except Exception:
        return 64 * 1024 * 1024  # v7x per-TC VMEM; smallest across v5e/v6e/v7x


def _pick_tile(m_eff, k_eff, n_eff, in_dtype, out_dtype, budget, *, max_rows=8192):
    """Largest row tile whose (lane-padded) double-buffered footprint fits budget."""
    sub = max(_sublane(in_dtype), _sublane(out_dtype))
    in_b = jnp.dtype(in_dtype).itemsize
    out_b = jnp.dtype(out_dtype).itemsize
    kp = _round_up(k_eff, LANE)          # last-dim lane padding in VMEM
    np_ = _round_up(n_eff, LANE)
    # Block-resident W + bias (double-buffered by the pipeline; single-buffering
    # them is a further win only for large weights — skipped at this size).
    resident = 2 * (_round_up(k_eff, sub) * np_ * in_b + sub * np_ * 4)
    # Streamed x row-tile + out row-tile, double-buffered, lane-padded.
    per_row = 2 * (kp * in_b + np_ * out_b)
    by_vmem = max(sub, (budget - resident) // max(per_row, 1))
    tile = min(max_rows, by_vmem, _round_up(m_eff, sub))
    # Encourage >=4 grid steps (2 per TC on v7x + intra-core overlap) only when
    # the resulting tiles stay large; on 1-TC v5e/v6e small m keeps one big tile.
    quarter = _round_up(-(-m_eff // 4), sub)
    if quarter >= 512:
        tile = min(tile, quarter)
    return max(sub, (tile // sub) * sub)


@functools.partial(jax.jit, static_argnames=("compute_dtype", "out_dtype", "tm"))
def linear_embedding(x, w, b, *, compute_dtype=None, out_dtype=None, tm=None):
    """y = x @ w.T + b over the last axis of x (PyTorch nn.Linear semantics).

    x: (..., n_regions); w: (embed_dim, n_regions); b: (embed_dim,).
    """
    *lead, k = x.shape
    n, kw = w.shape
    assert kw == k, "weight in-features must match x's last dim"
    if out_dtype is None:
        out_dtype = jnp.promote_types(x.dtype, w.dtype)
    out_dtype = jnp.dtype(out_dtype)

    if compute_dtype is not None:
        x = x.astype(compute_dtype)
        w = w.astype(compute_dtype)

    m = math.prod(lead) if lead else 1
    x2 = x.reshape(m, k)
    w_kn = w.T                              # one-time XLA transpose -> (K, N)
    b_f32 = b.astype(jnp.float32)

    # Lane-dense output packing: g logical rows per 128-wide slab row.
    g = LANE // n if (0 < n < LANE and LANE % n == 0) else 1
    dense = (g > 1) and (m % g == 0) and (tm is None or tm % g == 0)

    if dense:
        m_eff, k_eff, n_eff = m // g, g * k, LANE
        x_in = x2.reshape(m_eff, k_eff)                       # free (row-major)
        w_in = jnp.kron(jnp.eye(g, dtype=w_kn.dtype), w_kn)   # block-diag (g*k, 128)
        b_in = jnp.tile(b_f32, g).reshape(1, LANE)
    else:
        m_eff, k_eff, n_eff = m, k, n
        x_in, w_in, b_in = x2, w_kn, b_f32.reshape(1, n)
    # TODO(synk): add an N grid axis (128/256-lane tiles) for large embed_dim
    # where the resident W / output block would not fit VMEM.

    cap = _vmem_capacity_bytes()
    budget = cap // 2
    vmem_limit = min((cap * 3) // 4, 128 * 1024 * 1024)

    if tm is None:
        tile = _pick_tile(m_eff, k_eff, n_eff, x_in.dtype, out_dtype, budget)
    else:
        sub = max(_sublane(x_in.dtype), _sublane(out_dtype))
        tile = max(sub, _round_up(tm // g if dense else tm, sub))
    if tile >= m_eff:
        tile = m_eff            # single full-extent block (no boundary padding)

    grid = (pl.cdiv(m_eff, tile),)

    xb = jnp.dtype(x_in.dtype).itemsize
    ob = out_dtype.itemsize
    cost = pl.CostEstimate(
        flops=2 * m_eff * k_eff * n_eff,
        transcendentals=0,
        bytes_accessed=(m_eff * k_eff * xb + k_eff * n_eff * xb
                        + n_eff * 4 + m_eff * n_eff * ob),
    )

    out = pl.pallas_call(
        _linear_kernel,
        out_shape=jax.ShapeDtypeStruct((m_eff, n_eff), out_dtype),
        grid_spec=pltpu.PrefetchScalarGridSpec(
            num_scalar_prefetch=0,
            grid=grid,
            in_specs=[
                pl.BlockSpec((tile, k_eff), lambda i: (i, 0)),   # streamed x rows
                pl.BlockSpec((k_eff, n_eff), lambda i: (0, 0)),  # resident W
                pl.BlockSpec((1, n_eff), lambda i: (0, 0)),      # resident bias
            ],
            out_specs=pl.BlockSpec((tile, n_eff), lambda i: (i, 0)),
        ),
        compiler_params=pltpu.CompilerParams(
            dimension_semantics=("parallel",),     # shards M across v7x's 2 TCs
            vmem_limit_bytes=int(vmem_limit),
        ),
        cost_estimate=cost,
    )(x_in, w_in, b_in)

    if dense:
        out = out.reshape(m, n)
    return out.reshape(*lead, n)


def _init_params(key, n_regions, embed_dim):
    # Deterministic init mirroring nn.Linear: U(-1/sqrt(in), 1/sqrt(in)).
    kw_, kb_ = jax.random.split(key)
    bound = 1.0 / math.sqrt(n_regions)
    w = jax.random.uniform(kw_, (embed_dim, n_regions), jnp.float32, -bound, bound)
    b = jax.random.uniform(kb_, (embed_dim,), jnp.float32, -bound, bound)
    return w, b


if __name__ == "__main__":
    key = jax.random.PRNGKey(0)
    kx, kp, kx2 = jax.random.split(key, 3)

    # Small shapes consistent with the module.
    batch, seq, n_regions, embed_dim = 2, 8, 16, 32
    x = jax.random.normal(kx, (batch, seq, n_regions), jnp.float32)
    w, b = _init_params(kp, n_regions, embed_dim)

    # Main path: lane-dense packed output (m*n % 128 == 0).
    y = jax.block_until_ready(linear_embedding(x, w, b))
    y_ref = x @ w.T + b
    assert y.shape == (batch, seq, embed_dim)
    assert jnp.allclose(y, y_ref, atol=1e-5, rtol=1e-5)

    # Ragged M (not packable / not a tile multiple): exercises the cdiv grid
    # and masked-tail fallback path.
    x_rag = jax.random.normal(kx2, (3, 7, n_regions), jnp.float32)
    y_rag = jax.block_until_ready(linear_embedding(x_rag, w, b, tm=8))
    assert jnp.allclose(y_rag, x_rag @ w.T + b, atol=1e-5, rtol=1e-5)

    # Reduced-precision path: bf16 compute + bf16 output halves both the read
    # and the dominant write HBM streams (f32 accumulation + f32 bias kept).
    y_bf16 = jax.block_until_ready(
        linear_embedding(x, w, b, compute_dtype=jnp.bfloat16,
                         out_dtype=jnp.bfloat16))
    assert y_bf16.dtype == jnp.bfloat16
    assert jnp.allclose(y_bf16.astype(jnp.float32), y_ref, atol=5e-2, rtol=5e-2)

    print("KERNEL_OK")
</pallas_src>

<mosaic_0001>
module attributes {stable_mosaic.version = 11 : i64} {
  func.func @_linear_kernel(%arg0: i32, %arg1: memref<4x64xf32, #tpu.memory_space<vmem>>, %arg2: memref<64x128xf32, #tpu.memory_space<vmem>>, %arg3: memref<1x128xf32, #tpu.memory_space<vmem>>, %arg4: memref<4x128xf32, #tpu.memory_space<vmem>>) attributes {dimension_semantics = [#tpu.dimension_semantics<parallel>], iteration_bounds = array<i64: 1>, scalar_prefetch = 0 : i64, scratch_operands = 0 : i64, tpu.core_type = #tpu.core_type<tc>, window_params = [{transform_indices = @transform_0, window_bounds = array<i64: 4, 64>}, {pipeline_mode = #tpu.pipeline_mode<synchronous>, transform_indices = @transform_1, window_bounds = array<i64: 64, 128>}, {pipeline_mode = #tpu.pipeline_mode<synchronous>, transform_indices = @transform_2, window_bounds = array<i64: 1, 128>}, {transform_indices = @transform_3, window_bounds = array<i64: 4, 128>}]} {
    %c0 = arith.constant 0 : index
    %c0_0 = arith.constant 0 : index
    %0 = vector.load %arg1[%c0, %c0_0] : memref<4x64xf32, #tpu.memory_space<vmem>>, vector<4x64xf32>
    %c0_1 = arith.constant 0 : index
    %c0_2 = arith.constant 0 : index
    %1 = vector.load %arg2[%c0_1, %c0_2] : memref<64x128xf32, #tpu.memory_space<vmem>>, vector<64x128xf32>
    %cst = arith.constant dense<0.000000e+00> : vector<4x128xf32>
    %2 = tpu.matmul %0, %1, %cst {dimension_numbers = #tpu.dot_dimension_numbers<[1], [0], [0], [1], [0, 0, 1, 1], [], []>} : vector<4x64xf32>, vector<64x128xf32>, vector<4x128xf32> -> vector<4x128xf32>
    %c0_3 = arith.constant 0 : index
    %c0_4 = arith.constant 0 : index
    %3 = vector.load %arg3[%c0_3, %c0_4] : memref<1x128xf32, #tpu.memory_space<vmem>>, vector<1x128xf32>
    %4 = vector.broadcast %3 : vector<1x128xf32> to vector<4x128xf32>
    %5 = arith.addf %2, %4 : vector<4x128xf32>
    %c0_5 = arith.constant 0 : index
    %c0_6 = arith.constant 0 : index
    %6 = vector.load %arg4[%c0_5, %c0_6] : memref<4x128xf32, #tpu.memory_space<vmem>>, vector<4x128xf32>
    tpu.vector_store %arg4[%c0_5, %c0_6], %5 {strides = array<i32>} : memref<4x128xf32, #tpu.memory_space<vmem>>, vector<4x128xf32>,
    return
  }
  func.func @transform_0(%arg0: i32) -> (i32, i32) {
    %c0_i32 = arith.constant 0 : i32
    %c0_i32_0 = arith.constant 0 : i32
    return %arg0, %c0_i32 : i32, i32
  }
  func.func @transform_1(%arg0: i32) -> (i32, i32) {
    %c0_i32 = arith.constant 0 : i32
    %c0_i32_0 = arith.constant 0 : i32
    %c0_i32_1 = arith.constant 0 : i32
    return %c0_i32, %c0_i32_0 : i32, i32
  }
  func.func @transform_2(%arg0: i32) -> (i32, i32) {
    %c0_i32 = arith.constant 0 : i32
    %c0_i32_0 = arith.constant 0 : i32
    %c0_i32_1 = arith.constant 0 : i32
    return %c0_i32, %c0_i32_0 : i32, i32
  }
  func.func @transform_3(%arg0: i32) -> (i32, i32) {
    %c0_i32 = arith.constant 0 : i32
    %c0_i32_0 = arith.constant 0 : i32
    return %arg0, %c0_i32 : i32, i32
  }
}

</mosaic_0001>

<bundles_post_ra>
// kernel: tile.8
= control target key start
LH: loop header
LB: loop body
LE: loop exit
PB: predicated region body
PF: predicated region fallthrough
CT: control target
= control target key end

     0   :  { %s22_s0 = inlined_call_operand.vmem [shape: f32[32], index: 0, kind: input, shape index: {}]   ;;  %s23_s1 = inlined_call_operand.vmem [shape: f32[4,32], index: 1, kind: output, shape index: {}]  }
   0x1   :  { %v4_v0 = vld [vmem:[%s22_s0] ss:$0 sm:$0xff] }
   0x2   :  { %5 = vst [vmem:[%s23_s1] sm:$0xf] %v4_v0 }

// kernel: tile.9
= control target key start
LH: loop header
LB: loop body
LE: loop exit
PB: predicated region body
PF: predicated region fallthrough
CT: control target
= control target key end

     0   :  { %s37_s8 = smov 32   ;;  %s38_s9 = smov 64   ;;  %vm7_vm0 = vcmask 261120   ;;  %vm13_vm1 = vcmask 1048320   ;;  %vm19_vm2 = vcmask 785920   ;;  %vm25_vm3 = vcmask 523520   ;;  %s55_s0 = inlined_call_operand.vmem [shape: f32[4,32], index: 0, kind: input, shape index: {}]   ;;  %s56_s1 = inlined_call_operand.vmem [shape: f32[1,128], index: 1, kind: output, shape index: {}]  }
   0x1   :  { %v4_v0 = vld [vmem:[%s55_s0] sm:$0xf]  ;;  %s36_s0 = smov 96  }
   0x2   :  { %5 = vst [vmem:[#allocation1] sm:$0xf] %v4_v0 }
   0x9   :  { %v10_v1 = vld [vmem:[#allocation1 + $0x3] sm:$0x1]   ;;  %v22_v2 = vld [vmem:[#allocation1 + $0x1] sm:$0x1]   ;;  %v16_v3 = vld [vmem:[#allocation1 + $0x2] sm:$0x1]  }
   0xa   :  { %11 = vrot.lane.b32.xlu0 %v10_v1, %s36_s0  ;;  %23 = vrot.lane.b32.xlu1 %v22_v2, %s37_s8  ;;  %v6_v4 = vld [vmem:[#allocation1] sm:$0x1]  }
   0xb   :  { %8 = vst.msk [vmem:[#allocation0] sm:$0x1] %vm7_vm0, %v6_v4  }
  0x12   :  { %17 = vrot.lane.b32.xlu0 %v16_v3, %s38_s9 }
  0x7c   :  { %v12_v5 = vpop.permute.xlu0 %11   ;;  %v24_v6 = vpop.permute.xlu1 %23  }
  0x7d   :  { %14 = vst.msk [vmem:[#allocation0] sm:$0x1] %vm13_vm1, %v12_v5  }
  0x84   :  { %v18_v7 = vpop.permute.xlu0 %17  }
  0x85   :  { %20 = vst.msk [vmem:[#allocation0] sm:$0x1] %vm19_vm2, %v18_v7  }
  0x86   :  { %26 = vst.msk [vmem:[#allocation0] sm:$0x1] %vm25_vm3, %v24_v6  }
  0x8d   :  { %v29_v8 = vld [vmem:[#allocation0] sm:$0x1] }
  0x8e   :  { %32 = vst [vmem:[%s56_s1] sm:$0x1] %v29_v8 }

// kernel: linear_embedding.1
= control target key start
LH: loop header
LB: loop body
LE: loop exit
PB: predicated region body
PF: predicated region fallthrough
CT: control target
= control target key end

     0   :  { %vm27_vm0 = vcmask 523264   ;;  %s111_s1 = inlined_call_operand.vmem [shape: f32[64,128], index: 1, kind: input, shape index: {}]   ;;  %s112_s2 = inlined_call_operand.vmem [shape: f32[1,128], index: 2, kind: input, shape index: {}]   ;;  %s113_s0 = inlined_call_operand.vmem [shape: f32[4,64], index: 0, kind: input, shape index: {}]   ;;  %s114_s3 = inlined_call_operand.vmem [shape: f32[4,128], index: 3, kind: output, shape index: {}]  }
   0x1   :  { %v22_v0 = vld [vmem:[%s111_s1 + $0x38] sm:$0xff]  ;;  %v21_v1 = vld [vmem:[%s111_s1 + $0x30] sm:$0xff]  ;;  %v20_v2 = vld [vmem:[%s111_s1 + $0x28] sm:$0xff] }
   0x2   :  { %39 = vmatpush.msra.mxu0 %v22_v0  ;;  %v19_v3 = vld [vmem:[%s111_s1 + $0x20] sm:$0xff]  ;;  %v18_v4 = vld [vmem:[%s111_s1 + $0x18] sm:$0xff]  ;;  %v17_v5 = vld [vmem:[%s111_s1 + $0x10] sm:$0xff] }
   0x3   :  { %v16_v6 = vld [vmem:[%s111_s1 + $0x8] sm:$0xff]  ;;  %v15_v7 = vld [vmem:[%s111_s1] sm:$0xff] }
   0x4   :  { %40 = vmatpush.msra.mxu0 %v21_v1  ;;  %v14_v8 = vld [vmem:[%s113_s0] sm:$0xf] }
   0x5   :  { %v57_v9 = vld [vmem:[%s112_s2] ss:$0 sm:$0xff] }
   0x6   :  { %41 = vmatpush.msra.mxu0 %v20_v2 }
   0x8   :  { %42 = vmatpush.msra.mxu0 %v19_v3 }
   0xa   :  { %43 = vmatpush.msra.mxu0 %v18_v4 }
   0xc   :  { %44 = vmatpush.msra.mxu0 %v17_v5 }
   0xe   :  { %45 = vmatpush.msra.mxu0 %v16_v6 }
  0x10   :  { %46 = vmatpush.msra.mxu0 %v15_v7 }
  0x11   :  { %56 = vmatmul.msk.f32.vlgmr.msra.gmra.mxu0 %vm27_vm0, %v14_v8 }
  0x8e   :  { %v48_v10 = vpop.f32.mrf.mxu0 }
  0x8f   :  { %v49_v11 = vadd.f32 %v57_v9, %v48_v10 }
  0x91   :  { %51 = vst [vmem:[%s114_s3] sm:$0xf] %v49_v11 }

</bundles_post_ra>
